<compile_context>
chip_gen: v7x
topology: tpu7x:2x2x1
jax: 0.10.0
libtpu: 0.0.40
codegen_flags: <defaults>
</compile_context>

<pallas_src>
import functools

import jax
import jax.numpy as jnp
from jax.experimental import pallas as pl
from jax.experimental.pallas import tpu as pltpu


def _round_up(x, m):
    return (x + m - 1) // m * m


def _mlp_kernel(x_ref, w1_ref, b1_ref, w2_ref, b2_ref, o_ref):
    # x:  [TB, D_in]        f32  (cast to bf16 here; VPU slot has slack and
    #                             this avoids a wrapper-side pad+cast pass)
    # w1: [D_in, H_pad]     bf16    b1: [1, H_pad]      f32
    # w2: [H_pad, Dout_pad] bf16    b2: [1, Dout_pad]   f32
    # o:  [TB, Dout_pad]    bf16  (lane-dense 128-wide -> unmasked vst)
    x = x_ref[...].astype(jnp.bfloat16)
    h = jnp.dot(x, w1_ref[...], preferred_element_type=jnp.float32)
    h = jnp.maximum(h + b1_ref[...], 0.0)               # f32 bias + ReLU on VPU
    y = jnp.dot(h.astype(jnp.bfloat16), w2_ref[...],
                preferred_element_type=jnp.float32)
    o_ref[...] = (y + b2_ref[...]).astype(o_ref.dtype)


def _choose_tb(B):
    # Small batch: a single (possibly partial) block, multiple of 16 for bf16
    # sublane packing.
    if B <= 128:
        return _round_up(max(B, 16), 16)
    # Large batch: big tiles amortize the ~0.35us/grid-step overhead and keep
    # DMAs near the HBM roofline, but guarantee >= 2 grid programs so the
    # "parallel" batch axis can shard across v7x's two TensorCores.
    tb = min(1024, _round_up(pl.cdiv(B, 2), 16))
    return max(tb, 128)


@functools.partial(jax.jit, static_argnames=("tb",))
def active_wrapper_forward(x_nchw, params, *, tb=None):
    """Equivalent of ActiveWrapper(model)(x): just the wrapped model's forward."""
    w1, b1, w2, b2 = params
    B = x_nchw.shape[0]
    d_in = w1.shape[0]
    hidden = w1.shape[1]
    d_out = w2.shape[1]

    LANE = 128
    h_pad = _round_up(hidden, LANE)
    dout_pad = _round_up(d_out, LANE)

    if tb is None:
        tb = _choose_tb(B)
    # Partial trailing block is fine: rows are independent through both
    # matmuls, OOB reads are garbage rows, OOB output writes are clipped.
    grid = (pl.cdiv(B, tb),)

    # x stays f32 and unpadded (free reshape of contiguous NCHW); the kernel
    # casts it to bf16, so the dominant HBM stream is read exactly once.
    x_flat = x_nchw.reshape(B, d_in)

    # Weights/biases are tiny; pad to lane-dense 128 and cast once.
    # ReLU(0)=0 and zero-padded columns keep the padded results exact.
    w1p = jnp.pad(w1, ((0, 0), (0, h_pad - hidden))).astype(jnp.bfloat16)
    b1p = jnp.pad(b1, ((0, 0), (0, h_pad - hidden))).astype(jnp.float32)
    w2p = jnp.pad(w2, ((0, h_pad - hidden), (0, dout_pad - d_out))).astype(jnp.bfloat16)
    b2p = jnp.pad(b2, ((0, 0), (0, dout_pad - d_out))).astype(jnp.float32)

    out = pl.pallas_call(
        _mlp_kernel,
        out_shape=jax.ShapeDtypeStruct((B, dout_pad), jnp.bfloat16),
        grid_spec=pltpu.PrefetchScalarGridSpec(
            num_scalar_prefetch=0,
            grid=grid,
            in_specs=[
                pl.BlockSpec((tb, d_in), lambda i: (i, 0)),         # x: tiled over B
                pl.BlockSpec((d_in, h_pad), lambda i: (0, 0)),      # w1: resident
                pl.BlockSpec((1, h_pad), lambda i: (0, 0)),         # b1: resident
                pl.BlockSpec((h_pad, dout_pad), lambda i: (0, 0)),  # w2: resident
                pl.BlockSpec((1, dout_pad), lambda i: (0, 0)),      # b2: resident
            ],
            out_specs=pl.BlockSpec((tb, dout_pad), lambda i: (i, 0)),
        ),
        compiler_params=pltpu.CompilerParams(
            dimension_semantics=("parallel",),  # batch rows independent (v7x 2-TC)
        ),
    )(x_flat, w1p, b1p, w2p, b2p)

    # Lane slice + upcast to the wrapped model's output dtype, fused inside
    # this jit region (only d_out=10 lanes/row survive).
    return out[:, :d_out].astype(jnp.float32)


def init_params(key, d_in, hidden, d_out):
    # Deterministic synthetic init (stands in for the wrapped model's state_dict).
    k1, k2, k3, k4 = jax.random.split(key, 4)
    w1 = jax.random.normal(k1, (d_in, hidden), jnp.float32) * (1.0 / jnp.sqrt(d_in))
    b1 = jax.random.normal(k2, (1, hidden), jnp.float32) * 0.01
    w2 = jax.random.normal(k3, (hidden, d_out), jnp.float32) * (1.0 / jnp.sqrt(hidden))
    b2 = jax.random.normal(k4, (1, d_out), jnp.float32) * 0.01
    return w1, b1, w2, b2


if __name__ == "__main__":
    B, C, H, W = 2, 4, 16, 16          # NCHW input, as PyTorch would supply
    HIDDEN, NUM_CLASSES = 32, 10
    D_IN = C * H * W                   # 1024

    key = jax.random.PRNGKey(0)
    kx, kp = jax.random.split(key)
    x = jax.random.normal(kx, (B, C, H, W), jnp.float32)
    params = init_params(kp, D_IN, HIDDEN, NUM_CLASSES)

    out = active_wrapper_forward(x, params)
    jax.block_until_ready(out)
    assert out.shape == (B, NUM_CLASSES)

    # Reference check in plain JAX with the same roundings the kernel applies
    # (bf16 MXU operands, f32 accumulation/bias/ReLU, bf16 output writeback).
    w1, b1, w2, b2 = params
    hi = jax.lax.Precision.HIGHEST
    x_bf = x.reshape(B, D_IN).astype(jnp.bfloat16).astype(jnp.float32)
    w1_bf = w1.astype(jnp.bfloat16).astype(jnp.float32)
    w2_bf = w2.astype(jnp.bfloat16).astype(jnp.float32)
    h_ref = jnp.maximum(jnp.dot(x_bf, w1_bf, precision=hi) + b1, 0.0)
    h_ref = h_ref.astype(jnp.bfloat16).astype(jnp.float32)
    ref = jnp.dot(h_ref, w2_bf, precision=hi) + b2
    ref = ref.astype(jnp.bfloat16).astype(jnp.float32)   # kernel emits bf16
    assert jnp.allclose(out, ref, atol=2e-2, rtol=2e-2), (
        jnp.max(jnp.abs(out - ref)))

    # TODO(synk): reset_weights()/state_dict snapshotting are host-side parameter
    # management with no kernel equivalent; only forward() is implemented here.
    print("KERNEL_OK")
</pallas_src>

<mosaic_0001>
module attributes {stable_mosaic.version = 11 : i64} {
  func.func @_mlp_kernel(%arg0: i32, %arg1: memref<16x1024xf32, #tpu.memory_space<vmem>>, %arg2: memref<1024x128xbf16, #tpu.memory_space<vmem>>, %arg3: memref<1x128xf32, #tpu.memory_space<vmem>>, %arg4: memref<128x128xbf16, #tpu.memory_space<vmem>>, %arg5: memref<1x128xf32, #tpu.memory_space<vmem>>, %arg6: memref<16x128xbf16, #tpu.memory_space<vmem>>) attributes {dimension_semantics = [#tpu.dimension_semantics<parallel>], iteration_bounds = array<i64: 1>, scalar_prefetch = 0 : i64, scratch_operands = 0 : i64, tpu.core_type = #tpu.core_type<tc>, window_params = [{transform_indices = @transform_0, window_bounds = array<i64: 16, 1024>}, {pipeline_mode = #tpu.pipeline_mode<synchronous>, transform_indices = @transform_1, window_bounds = array<i64: 1024, 128>}, {pipeline_mode = #tpu.pipeline_mode<synchronous>, transform_indices = @transform_2, window_bounds = array<i64: 1, 128>}, {pipeline_mode = #tpu.pipeline_mode<synchronous>, transform_indices = @transform_3, window_bounds = array<i64: 128, 128>}, {pipeline_mode = #tpu.pipeline_mode<synchronous>, transform_indices = @transform_4, window_bounds = array<i64: 1, 128>}, {transform_indices = @transform_5, window_bounds = array<i64: 16, 128>}]} {
    %c0 = arith.constant 0 : index
    %c0_0 = arith.constant 0 : index
    %0 = vector.load %arg1[%c0, %c0_0] : memref<16x1024xf32, #tpu.memory_space<vmem>>, vector<16x1024xf32>
    %1 = arith.truncf %0 : vector<16x1024xf32> to vector<16x1024xbf16>
    %c0_1 = arith.constant 0 : index
    %c0_2 = arith.constant 0 : index
    %2 = vector.load %arg2[%c0_1, %c0_2] : memref<1024x128xbf16, #tpu.memory_space<vmem>>, vector<1024x128xbf16>
    %cst = arith.constant dense<0.000000e+00> : vector<16x128xf32>
    %3 = tpu.matmul %1, %2, %cst {dimension_numbers = #tpu.dot_dimension_numbers<[1], [0], [0], [1], [0, 0, 1, 1], [], []>} : vector<16x1024xbf16>, vector<1024x128xbf16>, vector<16x128xf32> -> vector<16x128xf32>
    %c0_3 = arith.constant 0 : index
    %c0_4 = arith.constant 0 : index
    %4 = vector.load %arg3[%c0_3, %c0_4] : memref<1x128xf32, #tpu.memory_space<vmem>>, vector<1x128xf32>
    %5 = vector.broadcast %4 : vector<1x128xf32> to vector<16x128xf32>
    %6 = arith.addf %3, %5 : vector<16x128xf32>
    %cst_5 = arith.constant 0.000000e+00 : f32
    %7 = vector.broadcast %cst_5 : f32 to vector<16x128xf32>
    %8 = arith.maximumf %6, %7 : vector<16x128xf32>
    %9 = arith.truncf %8 : vector<16x128xf32> to vector<16x128xbf16>
    %c0_6 = arith.constant 0 : index
    %c0_7 = arith.constant 0 : index
    %10 = vector.load %arg4[%c0_6, %c0_7] : memref<128x128xbf16, #tpu.memory_space<vmem>>, vector<128x128xbf16>
    %cst_8 = arith.constant dense<0.000000e+00> : vector<16x128xf32>
    %11 = tpu.matmul %9, %10, %cst_8 {dimension_numbers = #tpu.dot_dimension_numbers<[1], [0], [0], [1], [0, 0, 1, 1], [], []>} : vector<16x128xbf16>, vector<128x128xbf16>, vector<16x128xf32> -> vector<16x128xf32>
    %c0_9 = arith.constant 0 : index
    %c0_10 = arith.constant 0 : index
    %12 = vector.load %arg5[%c0_9, %c0_10] : memref<1x128xf32, #tpu.memory_space<vmem>>, vector<1x128xf32>
    %13 = vector.broadcast %12 : vector<1x128xf32> to vector<16x128xf32>
    %14 = arith.addf %11, %13 : vector<16x128xf32>
    %15 = arith.truncf %14 : vector<16x128xf32> to vector<16x128xbf16>
    %c0_11 = arith.constant 0 : index
    %c0_12 = arith.constant 0 : index
    %16 = vector.load %arg6[%c0_11, %c0_12] : memref<16x128xbf16, #tpu.memory_space<vmem>>, vector<16x128xbf16>
    tpu.vector_store %arg6[%c0_11, %c0_12], %15 {strides = array<i32>} : memref<16x128xbf16, #tpu.memory_space<vmem>>, vector<16x128xbf16>,
    return
  }
  func.func @transform_0(%arg0: i32) -> (i32, i32) {
    %c0_i32 = arith.constant 0 : i32
    %c0_i32_0 = arith.constant 0 : i32
    return %arg0, %c0_i32 : i32, i32
  }
  func.func @transform_1(%arg0: i32) -> (i32, i32) {
    %c0_i32 = arith.constant 0 : i32
    %c0_i32_0 = arith.constant 0 : i32
    %c0_i32_1 = arith.constant 0 : i32
    return %c0_i32, %c0_i32_0 : i32, i32
  }
  func.func @transform_2(%arg0: i32) -> (i32, i32) {
    %c0_i32 = arith.constant 0 : i32
    %c0_i32_0 = arith.constant 0 : i32
    %c0_i32_1 = arith.constant 0 : i32
    return %c0_i32, %c0_i32_0 : i32, i32
  }
  func.func @transform_3(%arg0: i32) -> (i32, i32) {
    %c0_i32 = arith.constant 0 : i32
    %c0_i32_0 = arith.constant 0 : i32
    %c0_i32_1 = arith.constant 0 : i32
    return %c0_i32, %c0_i32_0 : i32, i32
  }
  func.func @transform_4(%arg0: i32) -> (i32, i32) {
    %c0_i32 = arith.constant 0 : i32
    %c0_i32_0 = arith.constant 0 : i32
    %c0_i32_1 = arith.constant 0 : i32
    return %c0_i32, %c0_i32_0 : i32, i32
  }
  func.func @transform_5(%arg0: i32) -> (i32, i32) {
    %c0_i32 = arith.constant 0 : i32
    %c0_i32_0 = arith.constant 0 : i32
    return %arg0, %c0_i32 : i32, i32
  }
}

</mosaic_0001>

<bundles_post_ra>
// kernel: active_wrapper_forward.1
= control target key start
LH: loop header
LB: loop body
LE: loop exit
PB: predicated region body
PF: predicated region fallthrough
CT: control target
= control target key end

     0   :  { %v60_v30 = vlaneseq  ;;  %v1421_v33 = vmov 1983009808   ;;  %vm1423_vm0 = vmmov 0   ;;  %s1750_s0 = inlined_call_operand.vmem [shape: f32[2,1024], index: 0, kind: input, shape index: {}]   ;;  %s1751_s1 = inlined_call_operand.vmem [shape: bf16[1024,128], index: 1, kind: input, shape index: {}]   ;;  %s1752_s2 = inlined_call_operand.vmem [shape: f32[1,128], index: 2, kind: input, shape index: {}]   ;;  %s1753_s3 = inlined_call_operand.vmem [shape: bf16[128,128], index: 3, kind: input, shape index: {}]   ;;  %s1754_s4 = inlined_call_operand.vmem [shape: f32[1,128], index: 4, kind: input, shape index: {}]   ;;  %s1755_s5 = inlined_call_operand.vmem [shape: bf16[2,128], index: 5, kind: output, shape index: {}]  }
   0x1   :  { %v1325_v0 = vld [vmem:[%s1751_s1 + $0x40] sm:$0xff]   ;;  %v1329_v4 = vld [vmem:[%s1751_s1 + $0x48] sm:$0xff]   ;;  %v1333_v8 = vld [vmem:[%s1751_s1 + $0x50] sm:$0xff]   ;;  %v58_v34 = vunpack.c.l.s4 %v1421_v33 }
   0x2   :  { %v1326_v1 = vld [vmem:[%s1751_s1 + $0xc0] sm:$0xff]   ;;  %1204 = vmatprep.subr.bf16.mxu0 %v1325_v0  ;;  %v1330_v5 = vld [vmem:[%s1751_s1 + $0xc8] sm:$0xff]   ;;  %v1334_v9 = vld [vmem:[%s1751_s1 + $0xd0] sm:$0xff]   ;;  %v1551_v35 = vshrl.u32 %v60_v30, 7 }
   0x3   :  { %v1327_v2 = vld [vmem:[%s1751_s1] sm:$0xff]   ;;  %1226 = vmatprep.subr.bf16.mxu1 %v1326_v1  ;;  %v1331_v6 = vld [vmem:[%s1751_s1 + $0x8] sm:$0xff]   ;;  %v1335_v10 = vld [vmem:[%s1751_s1 + $0x10] sm:$0xff]   ;;  %v59_v38 = vunpack.c.0.s8 %v58_v34 }
   0x4   :  { %v1328_v3 = vld [vmem:[%s1751_s1 + $0x80] sm:$0xff]   ;;  %1205 = vmatpush3.bf16.msra.mxu0 %v1327_v2  ;;  %v1332_v7 = vld [vmem:[%s1751_s1 + $0x88] sm:$0xff]   ;;  %v1336_v11 = vld [vmem:[%s1751_s1 + $0x90] sm:$0xff]  }
   0x5   :  { %1227 = vmatpush3.bf16.msra.mxu1 %v1328_v3  ;;  %1206 = vmatprep.subr.bf16.mxu0 %v1329_v4  ;;  %v1337_v12 = vld [vmem:[%s1751_s1 + $0x58] sm:$0xff]   ;;  %v1341_v16 = vld [vmem:[%s1751_s1 + $0x60] sm:$0xff]   ;;  %v1345_v20 = vld [vmem:[%s1751_s1 + $0x68] sm:$0xff]   ;;  %v1575_v44 = vsub.s32 %v59_v38, %v1551_v35 }
   0x6   :  { %1228 = vmatprep.subr.bf16.mxu1 %v1330_v5  ;;  %v1338_v13 = vld [vmem:[%s1751_s1 + $0xd8] sm:$0xff]   ;;  %v1342_v17 = vld [vmem:[%s1751_s1 + $0xe0] sm:$0xff]   ;;  %v1346_v21 = vld [vmem:[%s1751_s1 + $0xe8] sm:$0xff]  }
   0x7   :  { %v1339_v14 = vld [vmem:[%s1751_s1 + $0x18] sm:$0xff]   ;;  %v1343_v18 = vld [vmem:[%s1751_s1 + $0x20] sm:$0xff]   ;;  %v1347_v22 = vld [vmem:[%s1751_s1 + $0x28] sm:$0xff]  }
   0x8   :  { %1207 = vmatpush3.bf16.msra.mxu0 %v1331_v6  ;;  %v1340_v15 = vld [vmem:[%s1751_s1 + $0x98] sm:$0xff]   ;;  %v1344_v19 = vld [vmem:[%s1751_s1 + $0xa0] sm:$0xff]   ;;  %v1348_v23 = vld [vmem:[%s1751_s1 + $0xa8] sm:$0xff]  }
   0x9   :  { %1229 = vmatpush3.bf16.msra.mxu1 %v1332_v7  ;;  %1208 = vmatprep.subr.bf16.mxu0 %v1333_v8  ;;  %v1349_v24 = vld [vmem:[%s1751_s1 + $0x70] sm:$0xff]   ;;  %v1353_v28 = vld [vmem:[%s1751_s1 + $0x78] sm:$0xff]   ;;  %v1369_v46 = vld [vmem:[%s1751_s1 + $0x140] sm:$0xff]  }
   0xa   :  { %1230 = vmatprep.subr.bf16.mxu1 %v1334_v9  ;;  %v1350_v25 = vld [vmem:[%s1751_s1 + $0xf0] sm:$0xff]   ;;  %v1354_v29 = vld [vmem:[%s1751_s1 + $0xf8] sm:$0xff]   ;;  %v1370_v51 = vld [vmem:[%s1751_s1 + $0x1c0] sm:$0xff]  }
   0xb   :  { %v1351_v26 = vld [vmem:[%s1751_s1 + $0x30] sm:$0xff]   ;;  %v1355_v31 = vld [vmem:[%s1751_s1 + $0x38] sm:$0xff]   ;;  %v1371_v60 = vld [vmem:[%s1751_s1 + $0x100] sm:$0xff]  }
   0xc   :  { %1209 = vmatpush3.bf16.msra.mxu0 %v1335_v10  ;;  %v1352_v27 = vld [vmem:[%s1751_s1 + $0xb0] sm:$0xff]   ;;  %v1356_v32 = vld [vmem:[%s1751_s1 + $0xb8] sm:$0xff]   ;;  %v1372_v1 = vld [vmem:[%s1751_s1 + $0x180] sm:$0xff]  }
   0xd   :  { %1231 = vmatpush3.bf16.msra.mxu1 %v1336_v11  ;;  %1210 = vmatprep.subr.bf16.mxu0 %v1337_v12  ;;  %v1357_v36 = vld [vmem:[%s1750_s0] ss:$16 sps:$4 sm:$0xff]   ;;  %v1365_v41 = vld [vmem:[%s1750_s0 + $0x4] ss:$16 sps:$4 sm:$0xff]   ;;  %v1373_v4 = vld [vmem:[%s1751_s1 + $0x148] sm:$0xff]  }
   0xe   :  { %1232 = vmatprep.subr.bf16.mxu1 %v1338_v13  ;;  %v1359_v37 = vld [vmem:[%s1750_s0 + $0x20] ss:$16 sps:$4 sm:$0xff]   ;;  %v1366_v42 = vld [vmem:[%s1750_s0 + $0x24] ss:$16 sps:$4 sm:$0xff]   ;;  %v63_v47 = vrot.slane %v1357_v36, %v1575_v44  ;;  %v70_v52 = vrot.slane %v1365_v41, %v1575_v44  ;;  %v1374_v7 = vld [vmem:[%s1751_s1 + $0x1c8] sm:$0xff]  }
   0xf   :  { %v1361_v39 = vld [vmem:[%s1750_s0 + $0x40] ss:$16 sps:$4 sm:$0xff]   ;;  %v1367_v43 = vld [vmem:[%s1750_s0 + $0x44] ss:$16 sps:$4 sm:$0xff]   ;;  %v77_v48 = vrot.slane %v1359_v37, %v1575_v44  ;;  %v84_v53 = vrot.slane %v1366_v42, %v1575_v44  ;;  %v1375_v8 = vld [vmem:[%s1751_s1 + $0x108] sm:$0xff]  }
  0x10   :  { %1211 = vmatpush3.bf16.msra.mxu0 %v1339_v14  ;;  %v1363_v40 = vld [vmem:[%s1750_s0 + $0x60] ss:$16 sps:$4 sm:$0xff]   ;;  %v1368_v45 = vld [vmem:[%s1750_s0 + $0x64] ss:$16 sps:$4 sm:$0xff]   ;;  %v135_v49 = vrot.slane %v1361_v39, %v1575_v44  ;;  %v142_v54 = vrot.slane %v1367_v43, %v1575_v44  ;;  %v1376_v9 = vld [vmem:[%s1751_s1 + $0x188] sm:$0xff]  }
  0x11   :  { %1233 = vmatpush3.bf16.msra.mxu1 %v1340_v15  ;;  %1212 = vmatprep.subr.bf16.mxu0 %v1341_v16  ;;  %v149_v50 = vrot.slane %v1363_v40, %v1575_v44  ;;  %v156_v55 = vrot.slane %v1368_v45, %v1575_v44  ;;  %v86_v56 = vcombine.high %v63_v47, %v77_v48  ;;  %v1377_v10 = vld [vmem:[%s1751_s1 + $0x150] sm:$0xff]   ;;  %v1381_v14 = vld [vmem:[%s1751_s1 + $0x158] sm:$0xff]  }
  0x12   :  { %1234 = vmatprep.subr.bf16.mxu1 %v1342_v17  ;;  %v85_v58 = vcombine.low %v63_v47, %v77_v48  ;;  %v88_v61 = vcombine.high %v70_v52, %v84_v53  ;;  %v87_v63 = vcombine.low %v70_v52, %v84_v53  ;;  %v1378_v11 = vld [vmem:[%s1751_s1 + $0x1d0] sm:$0xff]   ;;  %v1382_v15 = vld [vmem:[%s1751_s1 + $0x1d8] sm:$0xff]  }
  0x13   :  { %v158_v57 = vcombine.high %v135_v49, %v149_v50  ;;  %v157_v59 = vcombine.low %v135_v49, %v149_v50  ;;  %v160_v62 = vcombine.high %v142_v54, %v156_v55  ;;  %v159_v0 = vcombine.low %v142_v54, %v156_v55  ;;  %v1379_v12 = vld [vmem:[%s1751_s1 + $0x110] sm:$0xff]   ;;  %v1383_v16 = vld [vmem:[%s1751_s1 + $0x118] sm:$0xff]  }
  0x14   :  { %1213 = vmatpush3.bf16.msra.mxu0 %v1343_v18  ;;  %v1380_v13 = vld [vmem:[%s1751_s1 + $0x190] sm:$0xff]   ;;  %v1384_v17 = vld [vmem:[%s1751_s1 + $0x198] sm:$0xff]   ;;  %v1385_v18 = vld [vmem:[%s1751_s1 + $0x160] sm:$0xff]  }
  0x15   :  { %1235 = vmatpush3.bf16.msra.mxu1 %v1344_v19  ;;  %1214 = vmatprep.subr.bf16.mxu0 %v1345_v20  ;;  %v214_v2 = vpack.c.bf16 %v158_v57, %v86_v56  ;;  %v213_v3 = vpack.c.bf16 %v157_v59, %v85_v58  ;;  %v216_v5 = vpack.c.bf16 %v160_v62, %v88_v61  ;;  %v1386_v19 = vld [vmem:[%s1751_s1 + $0x1e0] sm:$0xff]   ;;  %v1397_v30 = vld [vmem:[%s1751_s1 + $0x178] sm:$0xff]  }
  0x16   :  { %1236 = vmatprep.subr.bf16.mxu1 %v1346_v21  ;;  %v215_v6 = vpack.c.bf16 %v159_v0, %v87_v63  ;;  %v1387_v20 = vld [vmem:[%s1751_s1 + $0x120] sm:$0xff]   ;;  %v1400_v33 = vld [vmem:[%s1751_s1 + $0x1b8] sm:$0xff]  }
  0x17   :  { %772 = vmatprep.mubr.bf16.mxu0 %v214_v2  ;;  %813 = vmatprep.mubr.bf16.mxu1 %v216_v5  ;;  %v1388_v21 = vld [vmem:[%s1751_s1 + $0x1a0] sm:$0xff]   ;;  %v1401_v34 = vld [vmem:[%s1750_s0 + $0x8] ss:$16 sps:$4 sm:$0xff]   ;;  %v1409_v39 = vld [vmem:[%s1750_s0 + $0xc] ss:$16 sps:$4 sm:$0xff]  }
  0x18   :  { %1215 = vmatpush3.bf16.msra.mxu0 %v1347_v22  ;;  %v1389_v22 = vld [vmem:[%s1751_s1 + $0x168] sm:$0xff]   ;;  %v99_v41 = vrot.slane %v1401_v34, %v1575_v44  ;;  %v106_v48 = vrot.slane %v1409_v39, %v1575_v44  ;;  %v1413_v0 = vld [vmem:[%s1753_s3] sm:$0xff]   ;;  %v1415_v2 = vld [vmem:[%s1753_s3 + $0x10] sm:$0xff]  }
  0x19   :  { %1237 = vmatpush3.bf16.msra.mxu1 %v1348_v23  ;;  %1216 = vmatprep.subr.bf16.mxu0 %v1349_v24  ;;  %v1390_v23 = vld [vmem:[%s1751_s1 + $0x1e8] sm:$0xff]  }
  0x1a   :  { %1238 = vmatprep.subr.bf16.mxu1 %v1350_v25  ;;  %v1391_v24 = vld [vmem:[%s1751_s1 + $0x128] sm:$0xff]  }
  0x1b   :  { %v1392_v25 = vld [vmem:[%s1751_s1 + $0x1a8] sm:$0xff]  }
  0x1c   :  { %1217 = vmatpush3.bf16.msra.mxu0 %v1351_v26  ;;  %v1393_v26 = vld [vmem:[%s1751_s1 + $0x170] sm:$0xff]   ;;  %v1403_v36 = vld [vmem:[%s1750_s0 + $0x28] ss:$16 sps:$4 sm:$0xff]   ;;  %v1410_v40 = vld [vmem:[%s1750_s0 + $0x2c] ss:$16 sps:$4 sm:$0xff]  }
  0x1d   :  { %1239 = vmatpush3.bf16.msra.mxu1 %v1352_v27  ;;  %1218 = vmatprep.subr.bf16.mxu0 %v1353_v28  ;;  %v1394_v27 = vld [vmem:[%s1751_s1 + $0x1f0] sm:$0xff]   ;;  %v1405_v37 = vld [vmem:[%s1750_s0 + $0x48] ss:$16 sps:$4 sm:$0xff]   ;;  %v113_v42 = vrot.slane %v1403_v36, %v1575_v44  ;;  %v1411_v45 = vld [vmem:[%s1750_s0 + $0x4c] ss:$16 sps:$4 sm:$0xff]   ;;  %v120_v49 = vrot.slane %v1410_v40, %v1575_v44 }
  0x1e   :  { %1240 = vmatprep.subr.bf16.mxu1 %v1354_v29  ;;  %v1395_v28 = vld [vmem:[%s1751_s1 + $0x130] sm:$0xff]   ;;  %v1407_v38 = vld [vmem:[%s1750_s0 + $0x68] ss:$16 sps:$4 sm:$0xff]   ;;  %v171_v43 = vrot.slane %v1405_v37, %v1575_v44 }
  0x1f   :  { %v1396_v29 = vld [vmem:[%s1751_s1 + $0x1b0] sm:$0xff]   ;;  %v185_v47 = vrot.slane %v1407_v38, %v1575_v44  ;;  %v122_v50 = vcombine.high %v99_v41, %v113_v42  ;;  %v121_v53 = vcombine.low %v99_v41, %v113_v42  ;;  %v124_v55 = vcombine.high %v106_v48, %v120_v49  ;;  %v1418_v5 = vld [vmem:[%s1753_s3 + $0x28] sm:$0xff]  }
  0x20   :  { %1219 = vmatpush3.bf16.msra.mxu0 %v1355_v31  ;;  %v1398_v31 = vld [vmem:[%s1751_s1 + $0x1f8] sm:$0xff]   ;;  %v123_v57 = vcombine.low %v106_v48, %v120_v49  ;;  %v1190_v49 = vld [vmem:[%s1754_s4] ss:$0 sm:$0xff] }
  0x21   :  { %1241 = vmatpush3.bf16.msra.mxu1 %v1356_v32  ;;  %1248 = vmatprep.subr.bf16.mxu0 %v1369_v46  ;;  %v1399_v32 = vld [vmem:[%s1751_s1 + $0x138] sm:$0xff]   ;;  %v194_v54 = vcombine.high %v171_v43, %v185_v47  ;;  %v193_v56 = vcombine.low %v171_v43, %v185_v47 }
  0x22   :  { %1270 = vmatprep.subr.bf16.mxu1 %v1370_v51  ;;  %v1412_v46 = vld [vmem:[%s1750_s0 + $0x6c] ss:$16 sps:$4 sm:$0xff]   ;;  %v178_v51 = vrot.slane %v1411_v45, %v1575_v44 }
  0x23   :  { %773 = vmatmul.mubr.bf16.vlgmr.msra.gmra.mrb[0].mxu0 %v213_v3  ;;  %v192_v52 = vrot.slane %v1412_v46, %v1575_v44  ;;  %v217_v61 = vpack.c.bf16 %v193_v56, %v121_v53  ;;  %v1422_v44 = vmov 0.0   ;;  %v1416_v3 = vld [vmem:[%s1753_s3 + $0x18] sm:$0xff]   ;;  %v1424_v46 = vmov 1966171168  }
  0x24   :  { %814 = vmatmul.mubr.bf16.vlgmr.msra.gmra.mrb[0].mxu1 %v215_v6  ;;  %1249 = vmatpush3.bf16.msra.mxu0 %v1371_v60  ;;  %v218_v60 = vpack.c.bf16 %v194_v54, %v122_v50  ;;  %v1419_v6 = vld [vmem:[%s1753_s3 + $0x30] sm:$0xff]   ;;  %v1023_v47 = vunpack.c.l.s4 %v1424_v46 }
  0x25   :  { %1271 = vmatpush3.bf16.msra.mxu1 %v1372_v1  ;;  %1250 = vmatprep.subr.bf16.mxu0 %v1373_v4  ;;  %v196_v58 = vcombine.high %v178_v51, %v192_v52  ;;  %v195_v59 = vcombine.low %v178_v51, %v192_v52  ;;  %v1414_v1 = vld [vmem:[%s1753_s3 + $0x8] sm:$0xff]   ;;  %v1417_v4 = vld [vmem:[%s1753_s3 + $0x20] sm:$0xff]  }
  0x26   :  { %1272 = vmatprep.subr.bf16.mxu1 %v1374_v7  ;;  %854 = vmatprep.mubr.bf16.mxu0 %v218_v60  ;;  %v1420_v7 = vld [vmem:[%s1753_s3 + $0x38] sm:$0xff]   ;;  %v1024_v48 = vunpack.c.0.s8 %v1023_v47 }
  0x27   :  { %v220_v62 = vpack.c.bf16 %v196_v58, %v124_v55  ;;  %v219_v63 = vpack.c.bf16 %v195_v59, %v123_v57 }
  0x28   :  { %1251 = vmatpush3.bf16.msra.mxu0 %v1375_v8  ;;  %v1027_v55 = vsub.s32 %v1024_v48, %v1551_v35 }
  0x29   :  { %1273 = vmatpush3.bf16.msra.mxu1 %v1376_v9  ;;  %1252 = vmatprep.subr.bf16.mxu0 %v1377_v10  ;;  %v1125_v10 = vld [vmem:[%s1752_s2] ss:$0 sm:$0xff] }
  0x2a   :  { %1274 = vmatprep.subr.bf16.mxu1 %v1378_v11  ;;  %895 = vmatprep.mubr.bf16.mxu1 %v220_v62 }
  0x2c   :  { %1253 = vmatpush3.bf16.msra.mxu0 %v1379_v12 }
  0x2d   :  { %1275 = vmatpush3.bf16.msra.mxu1 %v1380_v13  ;;  %1254 = vmatprep.subr.bf16.mxu0 %v1381_v14 }
  0x2e   :  { %1276 = vmatprep.subr.bf16.mxu1 %v1382_v15 }
  0x30   :  { %1255 = vmatpush3.bf16.msra.mxu0 %v1383_v16 }
  0x31   :  { %1277 = vmatpush3.bf16.msra.mxu1 %v1384_v17  ;;  %1256 = vmatprep.subr.bf16.mxu0 %v1385_v18 }
  0x32   :  { %1278 = vmatprep.subr.bf16.mxu1 %v1386_v19 }
  0x34   :  { %1257 = vmatpush3.bf16.msra.mxu0 %v1387_v20 }
  0x35   :  { %1279 = vmatpush3.bf16.msra.mxu1 %v1388_v21  ;;  %1258 = vmatprep.subr.bf16.mxu0 %v1389_v22 }
  0x36   :  { %1280 = vmatprep.subr.bf16.mxu1 %v1390_v23 }
  0x38   :  { %1259 = vmatpush3.bf16.msra.mxu0 %v1391_v24 }
  0x39   :  { %1281 = vmatpush3.bf16.msra.mxu1 %v1392_v25  ;;  %1260 = vmatprep.subr.bf16.mxu0 %v1393_v26 }
  0x3a   :  { %1282 = vmatprep.subr.bf16.mxu1 %v1394_v27 }
  0x3c   :  { %1261 = vmatpush3.bf16.msra.mxu0 %v1395_v28 }
  0x3d   :  { %1283 = vmatpush3.bf16.msra.mxu1 %v1396_v29  ;;  %1262 = vmatprep.subr.bf16.mxu0 %v1397_v30 }
  0x3e   :  { %1284 = vmatprep.subr.bf16.mxu1 %v1398_v31 }
  0x40   :  { %1263 = vmatpush3.bf16.msra.mxu0 %v1399_v32 }
  0x41   :  { %1285 = vmatpush3.bf16.msra.mxu1 %v1400_v33  ;;  %1301 = vmatprep.subr.bf16.mxu0 %v1422_v44 }
  0x43   :  { %855 = vmatmul.mubr.bf16.vlgmr.msra.gmra.mrb[4].mxu0 %v217_v61 }
  0x44   :  { %896 = vmatmul.mubr.bf16.vlgmr.msra.gmra.mrb[4].mxu1 %v219_v63  ;;  %1302 = vmatpush3.bf16.msra.mxu0 %v1413_v0 }
  0x45   :  { %1303 = vmatprep.subr.bf16.mxu0 %v1422_v44  ;;  %1317 = vmatprep.mubr.msk.bf16.mxu0 %vm1423_vm0, %v1422_v44 }
  0x48   :  { %1304 = vmatpush3.bf16.msra.mxu0 %v1414_v1 }
  0x49   :  { %1305 = vmatprep.subr.bf16.mxu0 %v1422_v44 }
  0x4c   :  { %1306 = vmatpush3.bf16.msra.mxu0 %v1415_v2 }
  0x4d   :  { %1307 = vmatprep.subr.bf16.mxu0 %v1422_v44 }
  0x50   :  { %1308 = vmatpush3.bf16.msra.mxu0 %v1416_v3 }
  0x51   :  { %1309 = vmatprep.subr.bf16.mxu0 %v1422_v44 }
  0x54   :  { %1310 = vmatpush3.bf16.msra.mxu0 %v1417_v4 }
  0x55   :  { %1311 = vmatprep.subr.bf16.mxu0 %v1422_v44 }
  0x58   :  { %1312 = vmatpush3.bf16.msra.mxu0 %v1418_v5 }
  0x59   :  { %1313 = vmatprep.subr.bf16.mxu0 %v1422_v44 }
  0x5c   :  { %1314 = vmatpush3.bf16.msra.mxu0 %v1419_v6 }
  0x5d   :  { %1315 = vmatprep.subr.bf16.mxu0 %v1422_v44 }
  0x60   :  { %1316 = vmatpush3.bf16.msra.mxu0 %v1420_v7 }
  0xf6   :  { %v1220_v8 = vpop.f32.mrb[0].mxu0 }
  0xf7   :  { %v1242_v9 = vpop.f32.mrb[0].mxu1  ;;  %v1221_v11 = vpop.f32.mrb[1].mxu0 }
  0xf8   :  { %v1222_v12 = vadd.f32 %v1221_v11, %v1220_v8  ;;  %v1243_v13 = vpop.f32.mrb[1].mxu1  ;;  %v1223_v14 = vpop.f32.mrb[2].mxu0 }
  0xf9   :  { %v1244_v15 = vadd.f32 %v1243_v13, %v1242_v9  ;;  %v1245_v16 = vpop.f32.mrb[2].mxu1  ;;  %v1224_v17 = vpop.f32.mrb[3].mxu0 }
  0xfa   :  { %v775_v18 = vadd.f32 %v1222_v12, %v1125_v10  ;;  %v1225_v19 = vadd.f32 %v1224_v17, %v1223_v14  ;;  %v1246_v20 = vpop.f32.mrb[3].mxu1 }
  0xfb   :  { %v1247_v21 = vadd.f32 %v1246_v20, %v1245_v16 }
  0xfc   :  { %v816_v22 = vadd.f32 %v1244_v15, %v775_v18  ;;  %v778_v23 = vadd.f32 %v1225_v19, %v1125_v10 }
  0xfe   :  { %v819_v24 = vadd.f32 %v1247_v21, %v778_v23 }
 0x116   :  { %v1264_v25 = vpop.f32.mrb[4].mxu0 }
 0x117   :  { %v1286_v26 = vpop.f32.mrb[4].mxu1  ;;  %v1265_v27 = vpop.f32.mrb[5].mxu0 }
 0x118   :  { %v1266_v28 = vadd.f32 %v1265_v27, %v1264_v25  ;;  %v1287_v29 = vpop.f32.mrb[5].mxu1  ;;  %v1267_v30 = vpop.f32.mrb[6].mxu0 }
 0x119   :  { %v1288_v31 = vadd.f32 %v1287_v29, %v1286_v26  ;;  %v1289_v32 = vpop.f32.mrb[6].mxu1  ;;  %v1268_v33 = vpop.f32.mrb[7].mxu0 }
 0x11a   :  { %v857_v34 = vadd.f32 %v1266_v28, %v816_v22  ;;  %v1269_v36 = vadd.f32 %v1268_v33, %v1267_v30  ;;  %v1290_v37 = vpop.f32.mrb[7].mxu1 }
 0x11b   :  { %v1291_v38 = vadd.f32 %v1290_v37, %v1289_v32 }
 0x11c   :  { %v898_v39 = vadd.f32 %v1288_v31, %v857_v34  ;;  %v860_v40 = vadd.f32 %v1269_v36, %v819_v24 }
 0x11e   :  { %v901_v41 = vadd.f32 %v1291_v38, %v860_v40  ;;  %v904_v42 = vmax.f32 %v898_v39, 0.0 }
 0x120   :  { %v905_v43 = vmax.f32 %v901_v41, 0.0 }
 0x122   :  { %v906_v45 = vpack.c.bf16 %v905_v43, %v904_v42 }
 0x124   :  { %1318 = vmatmul.mubr.bf16.vlgmr.msra.gmra.mrb[8].mxu0 %v906_v45 }
 0x1f7   :  { %v1012_v50 = vpop.f32.mrb[8].mxu0 }
 0x1f8   :  { %v1319_v51 = vpop.f32.mrb[9].mxu0  ;;  %v1013_v53 = vadd.f32 %v1190_v49, %v1012_v50 }
 0x1f9   :  { %v1015_v52 = vpop.f32.mrb[10].mxu0 }
 0x1fa   :  { %v1016_v54 = vadd.f32 %v1190_v49, %v1015_v52  ;;  %v1320_v56 = vpop.f32.mrb[11].mxu0 }
 0x1fc   :  { %v1019_v57 = vpack.c.bf16 %v1016_v54, %v1013_v53 }
 0x1fe   :  { %v1028_v58 = vrot.slane %v1019_v57, %v1027_v55 }
 0x200   :  { %1200 = vst.sshfl [vmem:[#allocation2] sm:$0x1 pattern:$0x73625140] %v1028_v58 }
 0x207   :  { %v1103_v59 = vld [vmem:[#allocation2] sm:$0x1] }
 0x208   :  { %1104 = vst [vmem:[%s1755_s5] sm:$0x1] %v1103_v59 }

</bundles_post_ra>
